<compile_context>
chip_gen: v6e
topology: v6e:2x2x1
jax: 0.10.0
libtpu: 0.0.40
codegen_flags: <defaults>
</compile_context>

<pallas_src>
import functools

import jax
import jax.numpy as jnp
from jax import lax
from jax.experimental import pallas as pl
from jax.experimental.pallas import tpu as pltpu

_LANE = 128  # lane width; Fout is padded to this so stores are unmasked


# --------------------------------------------------------------------------- #
# Budgeting helpers
# --------------------------------------------------------------------------- #
def _vmem_limit_bytes():
    """Generation-aware VMEM budget: ~48 MiB on v7x (64 MiB part), ~96-100 MiB
    on v5e/v6e (128 MiB parts)."""
    cap = 64 * 1024 * 1024
    try:
        info = pltpu.get_tpu_info()
        cap = int(getattr(info, "vmem_capacity_bytes", cap) or cap)
    except Exception:
        pass
    return min(cap * 3 // 4, 100 * 1024 * 1024)


def _pick_tile_rows(n, fin, vmem_limit):
    """Largest row tile (multiple of 128 preferred, >=16 enforced for bf16
    packing) whose double-buffered A strip + resident operands fit the VMEM
    budget, with at least 2 grid steps when possible (v7x megacore split)."""
    budget = int(0.8 * vmem_limit)

    def fits(tm):
        a_bytes = 2 * tm * n * 2                      # bf16 A strip, double-buffered
        x_bytes = 2 * n * fin * 2                     # resident X (conservative 2x)
        w_bytes = 2 * (fin * _LANE * 2 + _LANE * 4)   # resident W (bf16) + bias (f32)
        o_bytes = 2 * tm * _LANE * 4                  # output tile, double-buffered
        return a_bytes + x_bytes + w_bytes + o_bytes <= budget

    for tm in (1024, 512, 256, 128):
        if n % tm == 0 and n // tm >= 2 and fits(tm):
            return tm
    for tm in (64, 32, 16):
        if n % tm == 0 and fits(tm):
            return tm
    return n  # tiny graph: single full block


# --------------------------------------------------------------------------- #
# Fused GCN layer kernel: out_tile = epilogue(A_tile @ (X @ W) + b)
# --------------------------------------------------------------------------- #
def gcn_layer_kernel(a_ref, x_ref, w_ref, b_ref, out_ref, *, activation, num_valid):
    # Transform: X @ W in bf16 on the MXU, f32 accumulation.  X/W are resident
    # (constant index_map => DMA'd once); the recompute per strip is tiny.
    xw = jnp.dot(x_ref[...], w_ref[...], preferred_element_type=jnp.float32)
    # Propagate: A_tile @ XW (bf16 operands, f32 accumulation).
    z = jnp.dot(a_ref[...], xw.astype(jnp.bfloat16),
                preferred_element_type=jnp.float32)
    z = z + b_ref[...]  # bias broadcast in f32 (v5e-safe)
    if activation == "relu":
        z = jnp.maximum(z, 0.0)
    elif activation == "log_softmax":
        # Mask the lane padding (columns >= num_valid) out of the softmax.
        cols = lax.broadcasted_iota(jnp.int32, z.shape, 1)
        zm = jnp.where(cols < num_valid, z, jnp.float32(-1e30))
        m = jnp.max(zm, axis=1, keepdims=True)
        s = zm - m
        lse = jnp.log(jnp.sum(jnp.exp(s), axis=1, keepdims=True))
        z = s - lse
    out_ref[...] = z.astype(out_ref.dtype)


def gcn_layer(a_bf16, x_bf16, w_pad_bf16, b_pad_f32, *, activation, num_valid,
              out_dtype, tile_rows=None, vmem_limit=None):
    N = a_bf16.shape[0]
    Fin = x_bf16.shape[1]
    Fp = w_pad_bf16.shape[1]
    assert Fp == _LANE and b_pad_f32.shape == (1, _LANE)

    vmem_limit = _vmem_limit_bytes() if vmem_limit is None else vmem_limit
    TM = _pick_tile_rows(N, Fin, vmem_limit) if tile_rows is None else tile_rows
    assert N % TM == 0 and (TM == N or TM % 16 == 0), "bad row tile"
    steps = N // TM

    cost = pl.CostEstimate(
        flops=int(2 * N * Fin * Fp * steps + 2 * N * N * Fp),
        transcendentals=int(N * Fp) if activation == "log_softmax" else 0,
        bytes_accessed=int(N * N * 2 + N * Fin * 2 + Fin * Fp * 2 + Fp * 4
                           + N * Fp * jnp.dtype(out_dtype).itemsize),
    )
    kernel = functools.partial(gcn_layer_kernel, activation=activation,
                               num_valid=num_valid)
    return pl.pallas_call(
        kernel,
        out_shape=jax.ShapeDtypeStruct((N, Fp), out_dtype),
        grid_spec=pltpu.PrefetchScalarGridSpec(
            num_scalar_prefetch=0,
            grid=(steps,),
            in_specs=[
                pl.BlockSpec((TM, N), lambda i: (i, 0)),     # A_hat row strip (bf16)
                pl.BlockSpec((N, Fin), lambda i: (0, 0)),    # X, resident (bf16)
                pl.BlockSpec((Fin, Fp), lambda i: (0, 0)),   # W, resident (bf16)
                pl.BlockSpec((1, Fp), lambda i: (0, 0)),     # bias (f32)
            ],
            out_specs=pl.BlockSpec((TM, Fp), lambda i: (i, 0)),
        ),
        compiler_params=pltpu.CompilerParams(
            dimension_semantics=("parallel",),   # megacore split on v7x
            vmem_limit_bytes=vmem_limit,
        ),
        cost_estimate=cost,
    )(a_bf16, x_bf16, w_pad_bf16, b_pad_f32)


# --------------------------------------------------------------------------- #
# Full GCN forward: conv1 -> ReLU -> (dropout=identity) -> conv2 -> log_softmax
# --------------------------------------------------------------------------- #
def _pad2(a, rows, cols):
    r, c = a.shape
    return jnp.pad(a, ((0, rows - r), (0, cols - c)))


def gcn_forward(a_hat_bf16, x, w1, b1, w2, b2):
    N = a_hat_bf16.shape[0]
    Fin = x.shape[1]
    H = w1.shape[1]
    C = w2.shape[1]
    vmem_limit = _vmem_limit_bytes()

    x_bf = x.astype(jnp.bfloat16)                        # cast once, in wrapper
    w1p = _pad2(w1, Fin, _LANE).astype(jnp.bfloat16)     # (Fin, 128)
    b1p = _pad2(b1, 1, _LANE).astype(jnp.float32)        # (1, 128)
    w2p = _pad2(w2, _LANE, _LANE).astype(jnp.bfloat16)   # (128, 128); pad rows H->128
    b2p = _pad2(b2, 1, _LANE).astype(jnp.float32)        # (1, 128)

    h_pad = gcn_layer(a_hat_bf16, x_bf, w1p, b1p, activation="relu",
                      num_valid=H, out_dtype=jnp.bfloat16,
                      vmem_limit=vmem_limit)             # (N, 128), cols >= H are 0
    # F.dropout(x, training=False) == identity at inference.
    out_pad = gcn_layer(a_hat_bf16, h_pad, w2p, b2p, activation="log_softmax",
                        num_valid=C, out_dtype=jnp.float32,
                        vmem_limit=vmem_limit)           # (N, 128) f32
    return out_pad[:, :C]


# --------------------------------------------------------------------------- #
# Preprocessing glue (what GCNConv(normalize=True, cached=True) computes once)
# --------------------------------------------------------------------------- #
def normalized_adjacency(edge_index, edge_weight, num_nodes, dtype=jnp.bfloat16):
    """Dense D^-1/2 (A + I) D^-1/2, stored once in bf16 (no per-forward cast)."""
    if edge_weight is None:
        edge_weight = jnp.ones((edge_index.shape[1],), dtype=jnp.float32)
    A = jnp.zeros((num_nodes, num_nodes), dtype=jnp.float32)
    A = A.at[edge_index[0], edge_index[1]].add(edge_weight)
    A = A + jnp.eye(num_nodes, dtype=jnp.float32)  # add self-loops
    deg = jnp.sum(A, axis=1)
    dinv_sqrt = jnp.where(deg > 0.0, 1.0 / jnp.sqrt(deg), 0.0)
    return (A * dinv_sqrt[:, None] * dinv_sqrt[None, :]).astype(dtype)


def glorot(key, shape):
    limit = (6.0 / (shape[0] + shape[1])) ** 0.5
    return jax.random.uniform(key, shape, jnp.float32, -limit, limit)


if __name__ == "__main__":
    # Small synthetic "Cora-like" graph: N nodes, Fin input features,
    # hidden=16 (as in the module), C classes.
    N, F_IN, HIDDEN, C = 256, 128, 16, 8
    NUM_EDGES = 1024

    key = jax.random.PRNGKey(0)
    k_x, k_src, k_dst, k_w1, k_w2 = jax.random.split(key, 5)

    x = jax.random.normal(k_x, (N, F_IN), dtype=jnp.float32)          # data.x
    src = jax.random.randint(k_src, (NUM_EDGES,), 0, N)
    dst = jax.random.randint(k_dst, (NUM_EDGES,), 0, N)
    edge_index = jnp.stack([src, dst], axis=0)                        # data.edge_index
    edge_weight = None                                                # data.edge_attr

    # Parameters (PyG GCNConv: glorot weights, zero bias), deterministic.
    w1 = glorot(k_w1, (F_IN, HIDDEN))
    b1 = jnp.zeros((1, HIDDEN), dtype=jnp.float32)
    w2 = glorot(k_w2, (HIDDEN, C))
    b2 = jnp.zeros((1, C), dtype=jnp.float32)

    # Cached normalized adjacency, stored in bf16 at preprocessing time.
    a_hat_bf16 = normalized_adjacency(edge_index, edge_weight, N)

    out = gcn_forward(a_hat_bf16, x, w1, b1, w2, b2)
    out = jax.block_until_ready(out)

    # Reference mirroring the bf16 operand rounding (kernel uses bf16 MXU
    # operands with f32 accumulation) -> relaxed tolerance.
    a_ref = a_hat_bf16.astype(jnp.float32)
    x_ref = x.astype(jnp.bfloat16).astype(jnp.float32)
    h_ref = jnp.maximum(a_ref @ (x_ref @ w1) + b1, 0.0)
    h_ref = h_ref.astype(jnp.bfloat16).astype(jnp.float32)
    z_ref = a_ref @ (h_ref @ w2) + b2
    ref = jax.nn.log_softmax(z_ref, axis=1)

    assert out.shape == (N, C)
    max_diff = float(jnp.max(jnp.abs(out - ref)))
    assert jnp.allclose(out, ref, atol=5e-2, rtol=5e-2), (
        f"mismatch vs reference (max abs diff {max_diff})")

    print("KERNEL_OK")
</pallas_src>

<mosaic_0001>
module attributes {stable_mosaic.version = 11 : i64} {
  func.func @gcn_layer_kernel(%arg0: i32, %arg1: memref<128x256xbf16, #tpu.memory_space<vmem>>, %arg2: memref<256x128xbf16, #tpu.memory_space<vmem>>, %arg3: memref<128x128xbf16, #tpu.memory_space<vmem>>, %arg4: memref<1x128xf32, #tpu.memory_space<vmem>>, %arg5: memref<128x128xbf16, #tpu.memory_space<vmem>>) attributes {dimension_semantics = [#tpu.dimension_semantics<parallel>], iteration_bounds = array<i64: 2>, scalar_prefetch = 0 : i64, scratch_operands = 0 : i64, tpu.core_type = #tpu.core_type<tc>, window_params = [{transform_indices = @transform_0, window_bounds = array<i64: 128, 256>}, {pipeline_mode = #tpu.pipeline_mode<synchronous>, transform_indices = @transform_1, window_bounds = array<i64: 256, 128>}, {pipeline_mode = #tpu.pipeline_mode<synchronous>, transform_indices = @transform_2, window_bounds = array<i64: 128, 128>}, {pipeline_mode = #tpu.pipeline_mode<synchronous>, transform_indices = @transform_3, window_bounds = array<i64: 1, 128>}, {transform_indices = @transform_4, window_bounds = array<i64: 128, 128>}]} {
    %c0 = arith.constant 0 : index
    %c0_0 = arith.constant 0 : index
    %0 = vector.load %arg2[%c0, %c0_0] : memref<256x128xbf16, #tpu.memory_space<vmem>>, vector<256x128xbf16>
    %c0_1 = arith.constant 0 : index
    %c0_2 = arith.constant 0 : index
    %1 = vector.load %arg3[%c0_1, %c0_2] : memref<128x128xbf16, #tpu.memory_space<vmem>>, vector<128x128xbf16>
    %cst = arith.constant dense<0.000000e+00> : vector<256x128xf32>
    %2 = tpu.matmul %0, %1, %cst {dimension_numbers = #tpu.dot_dimension_numbers<[1], [0], [0], [1], [0, 0, 1, 1], [], []>} : vector<256x128xbf16>, vector<128x128xbf16>, vector<256x128xf32> -> vector<256x128xf32>
    %c0_3 = arith.constant 0 : index
    %c0_4 = arith.constant 0 : index
    %3 = vector.load %arg1[%c0_3, %c0_4] : memref<128x256xbf16, #tpu.memory_space<vmem>>, vector<128x256xbf16>
    %4 = arith.truncf %2 : vector<256x128xf32> to vector<256x128xbf16>
    %cst_5 = arith.constant dense<0.000000e+00> : vector<128x128xf32>
    %5 = tpu.matmul %3, %4, %cst_5 {dimension_numbers = #tpu.dot_dimension_numbers<[1], [0], [0], [1], [0, 0, 1, 1], [], []>} : vector<128x256xbf16>, vector<256x128xbf16>, vector<128x128xf32> -> vector<128x128xf32>
    %c0_6 = arith.constant 0 : index
    %c0_7 = arith.constant 0 : index
    %6 = vector.load %arg4[%c0_6, %c0_7] : memref<1x128xf32, #tpu.memory_space<vmem>>, vector<1x128xf32>
    %7 = vector.broadcast %6 : vector<1x128xf32> to vector<128x128xf32>
    %8 = arith.addf %5, %7 : vector<128x128xf32>
    %cst_8 = arith.constant 0.000000e+00 : f32
    %9 = vector.broadcast %cst_8 : f32 to vector<128x128xf32>
    %10 = arith.maximumf %8, %9 : vector<128x128xf32>
    %11 = arith.truncf %10 : vector<128x128xf32> to vector<128x128xbf16>
    %c0_9 = arith.constant 0 : index
    %c0_10 = arith.constant 0 : index
    %12 = vector.load %arg5[%c0_9, %c0_10] : memref<128x128xbf16, #tpu.memory_space<vmem>>, vector<128x128xbf16>
    tpu.vector_store %arg5[%c0_9, %c0_10], %11 {strides = array<i32>} : memref<128x128xbf16, #tpu.memory_space<vmem>>, vector<128x128xbf16>,
    return
  }
  func.func @transform_0(%arg0: i32) -> (i32, i32) {
    %c0_i32 = arith.constant 0 : i32
    %c0_i32_0 = arith.constant 0 : i32
    return %arg0, %c0_i32 : i32, i32
  }
  func.func @transform_1(%arg0: i32) -> (i32, i32) {
    %c0_i32 = arith.constant 0 : i32
    %c0_i32_0 = arith.constant 0 : i32
    %c0_i32_1 = arith.constant 0 : i32
    return %c0_i32, %c0_i32_0 : i32, i32
  }
  func.func @transform_2(%arg0: i32) -> (i32, i32) {
    %c0_i32 = arith.constant 0 : i32
    %c0_i32_0 = arith.constant 0 : i32
    %c0_i32_1 = arith.constant 0 : i32
    return %c0_i32, %c0_i32_0 : i32, i32
  }
  func.func @transform_3(%arg0: i32) -> (i32, i32) {
    %c0_i32 = arith.constant 0 : i32
    %c0_i32_0 = arith.constant 0 : i32
    %c0_i32_1 = arith.constant 0 : i32
    return %c0_i32, %c0_i32_0 : i32, i32
  }
  func.func @transform_4(%arg0: i32) -> (i32, i32) {
    %c0_i32 = arith.constant 0 : i32
    %c0_i32_0 = arith.constant 0 : i32
    return %arg0, %c0_i32 : i32, i32
  }
}

</mosaic_0001>

<bundles_post_ra>
// kernel: tpu_custom_call.1
= control target key start
LH: loop header
LB: loop body
LE: loop exit
PB: predicated region body
PF: predicated region fallthrough
CT: control target
= control target key end

     0   :  { %9 = vsyncpa [#allocation3], 0  ;;  %s1846_s0 = inlined_call_operand.hbm [shape: bf16[256,256], index: 0, kind: input, shape index: {}]   ;;  %s1847_s1 = inlined_call_operand.hbm [shape: bf16[256,128], index: 1, kind: input, shape index: {}]   ;;  %s1848_s2 = inlined_call_operand.hbm [shape: bf16[128,128], index: 2, kind: input, shape index: {}]   ;;  %s1849_s3 = inlined_call_operand.vmem [shape: f32[1,128], index: 3, kind: input, shape index: {}]   ;;  %s1850_s4 = inlined_call_operand.hbm [shape: bf16[256,128], index: 4, kind: output, shape index: {}]  }
   0x1   :  { %11 = vsyncpa [#allocation3 + $0x1], 0 }
   0x2   :  { %12 = vsyncpa [#allocation6], 0 }
   0x3   :  { %13 = vsyncpa [#allocation4], 0 }
   0x4   :  { %15 = vsyncpa [#allocation4 + $0x1], 0  ;;  %s1604_s15 = smov 0   ;;  %s1606_s16 = smov 0  }
   0x5   :  { %s1608_s17 = smov 0   ;;  %s1610_s18 = smov 0  }
   0x6 LB: > { %s1625_s19 = sadd.s32 4294967295, %s1567_s18   ;;  %s1020_s20 = sadd.s32 4294967294, %s1567_s18   ;;  %s1567_s18 = sphi %s1610_s18, %s1872_s18   ;;  %s1563_s17 = sphi %s1608_s17, %s1871_s17   ;;  %s1559_s16 = sphi %s1606_s16, %s1870_s16   ;;  %s1555_s15 = sphi %s1604_s15, %s1869_s15  }
   0x7   : > { %p41_p0 = scmp.ne.s32.totalorder %s1559_s16, %s1555_s15  ;;  %p1851_p1 = scmp.eq.s32.totalorder %s1625_s19, 0 }
   0x8   : > { %p134_p3 = scmp.eq.s32.totalorder %s1020_s20, 1  ;;  %p1021_p5 = scmp.ge.s32.totalorder %s1567_s18, 1 }
   0x9   : > { %p1634_p4 = por %p1851_p1, %p41_p0  ;;  %p141_p7 = scmp.lt.s32.totalorder %s1567_s18, 3 }
   0xa   : > { %p1639_p6 = por %p134_p3, %p41_p0  ;;  %s1569_s24 = smov [#allocation5]  }
   0xb   : > { %s1855_s21 = scalar_select %p1634_p4, 1, 0 }
   0xc   : > { %s1856_s22 = scalar_select %p1639_p6, 1, 0 }
   0xd   : > { %p1644_p8 = pnand %p1021_p5, %p141_p7  ;;  %s153_s25 = sshll.u32 %s1569_s24, 4  ;;  %s154_s25 = int_to_ptr.vmem [resolvable:$true] %s153_s25 }
   0xe   : > { %s1570_s27 = smov [#allocation7]   ;;  %s1430_s29 = scalar_lea.vmem %s154_s25, 2048 }
   0xf   : > { %s1857_s23 = scalar_select %p1644_p8, 1, 0 }
  0x10   : > { %p1310_p9 = pneg %p1644_p8  ;;  %s166_s28 = sshll.u32 %s1570_s27, 4  ;;  %s167_s28 = int_to_ptr.vmem [resolvable:$true] %s166_s28 }
  0x11   : > { %p1431_p13 = scmp.ne.s32.totalorder %s154_s25, %s1430_s29  ;;  %p1438_p5 = scmp.lt.s32.totalorder %s154_s25, %s154_s25 }
  0x12   : > { %p1653_p11 = pnand %p1310_p9, %p1851_p1  ;;  %p1439_p7 = scmp.lt.s32.totalorder %s1430_s29, %s1430_s29 }
  0x14   : > { %p1421_p12 = pneg %p1653_p11  ;;  %p1440_p10 = por %p1439_p7, %p1438_p5 }
  0x16   : > { %p1433_p0 = pnand %p1431_p13, %p1421_p12 }
  0x18   : > { %p1434_p3 = pneg %p1433_p0 }
  0x1a   : > { %p1441_p9 = pnand %p1440_p10, %p1434_p3 }
  0x1c   : > { %1444 = shalt.err (!%p1441_p9)
}
  0x1d   : > { %s1571_s30 = smov 64   ;;  %s1572_s5 = smov 4  }
  0x1e   : > { %1313 = dma.hbm_to_vmem [thread:$0]  (!%p1653_p11), %s1847_s1, 2048, %s154_s25, [#allocation6], %s1571_s30, %s1571_s30, %s1572_s5  }
  0x1f   : > { %s1456_s8 = scalar_lea.vmem %s167_s28, 1024  ;;  %p1464_p2 = scmp.lt.s32.totalorder %s167_s28, %s167_s28 }
  0x20   : > { %p1457_p1 = scmp.ne.s32.totalorder %s167_s28, %s1456_s8  ;;  %p1465_p6 = scmp.lt.s32.totalorder %s1456_s8, %s1456_s8 }
  0x22   : > { %p1459_p13 = pnand %p1457_p1, %p1421_p12  ;;  %p1466_p5 = por %p1465_p6, %p1464_p2 }
  0x24   : > { %p1460_p0 = pneg %p1459_p13 }
  0x26   : > { %p1467_p10 = pnand %p1466_p5, %p1460_p0 }
  0x28   : > { %1470 = shalt.err (!%p1467_p10)
}
  0x29   : > { %1316 = dma.hbm_to_vmem [thread:$0]  (!%p1653_p11), %s1848_s2, 1024, %s167_s28, [#allocation6], %s1571_s30, %s1571_s30, %s1572_s5  }
  0x2a   : > { %s1676_s11 = sadd.s32 1, %s1567_s18   ;;  %s28_s12 = sadd.s32 1, %s1563_s17 }
  0x2b   : > { %s25_s13 = ssub.s32 %s1567_s18, %s1676_s11  ;;  %p35_p1 = scmp.ne.s32.totalorder %s1563_s17, %s1559_s16 }
  0x2c   : > { %p26_p2 = scmp.eq.s32.totalorder %s25_s13, 0  ;;  %p36_p6 = scmp.eq.s32.totalorder %s1567_s18, 0 }
  0x2d   : > { %p1859_p12 = scmp.eq.s32.totalorder %s1625_s19, 1  ;;  %p1327_p7 = scmp.lt.s32.totalorder %s1567_s18, 2 }
  0x2e   : > { %s1692_s20 = scalar_select %p26_p2, %s1563_s17, %s28_s12  }
  0x2f   : > { %p1686_p3 = por %p1859_p12, %p35_p1  ;;  %p37_p9 = por %p36_p6, %p35_p1 }
  0x30   : > { %s183_s24 = sand.u32 1, %s1563_s17   ;;  %s1097_s26 = sshll.u32 %s1567_s18, 11 }
  0x31   : > { %s1860_s14 = scalar_select %p1686_p3, 1, 0 }
  0x32   : > { %s1025_s25 = sshll.u32 %s183_s24, 7  ;;  %s1699_s29 = scalar_lea.hbm %s1846_s0, %s1097_s26 }
  0x33   : > { %s187_s30 = scalar_lea.vmem [#allocation2], %s1025_s25  ;;  %p1703_p11 = pnand %p1327_p7, %p37_p9 }
  0x34   : > { %s195_s5 = sshll.u32 %s187_s30, 4  ;;  %s1707_s7 = scalar_lea.sflag [#allocation3], %s183_s24  ;;  %s1701_s5 = int_to_ptr.vmem [resolvable:$true] %s195_s5 }
  0x35   : > { %s1471_s8 = scalar_lea.hbm %s1699_s29, 2048  ;;  %p1473_p0 = pneg %p1703_p11 }
  0x36   : > { %p1472_p13 = scmp.ne.s32.totalorder %s1699_s29, %s1471_s8  ;;  %s1476_s12 = scalar_lea.hbm %s1846_s0, 4096 }
  0x37   : > { %p1477_p1 = scmp.lt.s32.totalorder %s1699_s29, %s1846_s0  ;;  %p1478_p2 = scmp.lt.s32.totalorder %s1476_s12, %s1471_s8 }
  0x38   : > { %p1474_p5 = pnand %p1473_p0, %p1472_p13 }
  0x39   : > { %p1479_p6 = por %p1478_p2, %p1477_p1 }
  0x3a   : > { %p1475_p10 = pneg %p1474_p5 }
  0x3c   : > { %p1480_p12 = pnand %p1479_p6, %p1475_p10 }
  0x3e   : > { %1483 = shalt.err (!%p1480_p12)
}
  0x3f   : > { %s1484_s24 = scalar_lea.vmem %s1701_s5, 2048  ;;  %s1573_s26 = smov [#allocation2]  }
  0x40   : > { %p1485_p7 = scmp.ne.s32.totalorder %s1701_s5, %s1484_s24  ;;  %s1489_s27 = sshll.u32 %s1573_s26, 4  ;;  %s1490_s27 = int_to_ptr.vmem [resolvable:$false] %s1489_s27 }
  0x41   : > { %s1491_s28 = scalar_lea.vmem %s1490_s27, 4096  ;;  %p1492_p5 = scmp.lt.s32.totalorder %s1701_s5, %s1490_s27 }
  0x42   : > { %p1487_p9 = pnand %p1485_p7, %p1473_p0  ;;  %p1493_p3 = scmp.lt.s32.totalorder %s1491_s28, %s1484_s24 }
  0x44   : > { %p1488_p13 = pneg %p1487_p9  ;;  %p1494_p4 = por %p1493_p3, %p1492_p5 }
  0x46   : > { %p1495_p8 = pnand %p1494_p4, %p1488_p13 }
  0x48   : > { %1498 = shalt.err (!%p1495_p8)
}
  0x49   : > { %s1574_s30 = smov 128   ;;  %s1575_s8 = smov 8  }
  0x4a   : > { %1320 = dma.hbm_to_vmem [thread:$0]  (!%p1703_p11), %s1699_s29, 2048, %s1701_s5, %s1707_s7, %s1574_s30, %s1574_s30, %s1575_s8  }
  0x4b   : > { %p1862_p0 = scmp.ne.s32.totalorder %s1857_s23, 0 }
  0x4c   : > { %s1731_s9 = sand.u32 (!%p1862_p0), 1, %s1559_s16   ;;  %p1863_p4 = scmp.ne.s32.totalorder (!%p1862_p0), %s1855_s21, 0 }
  0x4d   : > { %207 = sbr.rel (%p1862_p0) target bundleno = 683 (0x2ab), region = 36  ;;  %s1030_s10 = sshll.u32 (!%p1862_p0), %s1731_s9, 7 }
  0x4e   : > { %s210_s12 = scalar_lea.sflag (!%p1862_p0), [#allocation3], %s1731_s9  ;;  %s1735_s13 = scalar_lea.vmem (!%p1862_p0), [#allocation2], %s1030_s10 }
  0x52   : > { %1542 = dma.done.wait (%p1863_p4), %s210_s12, 2048  }
  0x53   : > { %1544 = vsyncadd (%p1863_p4), %s210_s12, 4294965248  ;;  %p1864_p8 = scmp.eq.s32.totalorder %s1625_s19, 0 }
  0x55   : > { %1546 = dma.done.wait (%p1864_p8), [#allocation6], 3072   ;;  %p1865_p3 = pmov %p1864_p8 }
  0x56   : > { %v1371_v0 = vld [vmem:[#allocation7 + $0x38] sm:$0xff]   ;;  %v1372_v1 = vld [vmem:[#allocation7 + $0x30] sm:$0xff]   ;;  %v1373_v2 = vld [vmem:[#allocation7 + $0x28] sm:$0xff]   ;;  %s1033_s29 = sshll.u32 %s1731_s9, 6  ;;  %s1114_s6 = sshll.u32 %s1625_s19, 10 }
  0x57   : > { %1548 = vsyncadd (%p1865_p3), [#allocation6], 4294964224  ;;  %1250 = vmatprep.subr.bf16.mxu0 %v1371_v0  ;;  %v1374_v3 = vld [vmem:[#allocation7 + $0x20] sm:$0xff]   ;;  %v1375_v5 = vld [vmem:[#allocation7 + $0x18] sm:$0xff]   ;;  %s1772_s5 = scalar_lea.vmem [#allocation8], %s1033_s29  ;;  %s1800_s26 = scalar_lea.hbm %s1850_s4, %s1114_s6 }
  0x58   : > { %1251 = vmatpush3.bf16.msra.mxu0 %v1371_v0  ;;  %v1379_v4 = vld [vmem:[#allocation5] sm:$0xff]   ;;  %v1376_v6 = vld [vmem:[#allocation7 + $0x10] sm:$0xff]   ;;  %v1377_v7 = vld [vmem:[#allocation7 + $0x8] sm:$0xff]   ;;  %s928_s7 = sshll.u32 %s1772_s5, 4  ;;  %s915_s27 = scalar_lea.sflag [#allocation4], %s1731_s9  ;;  %s1802_s7 = int_to_ptr.vmem [resolvable:$true] %s928_s7 }
  0x59   : > { %1252 = vmatprep.subr.bf16.mxu0 %v1372_v1  ;;  %1266 = vmatprep.mubr.bf16.mxu0 %v1379_v4  ;;  %v1378_v8 = vld [vmem:[#allocation7] sm:$0xff]   ;;  %v1380_v9 = vld [vmem:[#allocation5 + $0x8] sm:$0xff]   ;;  %v1381_v10 = vld [vmem:[#allocation5 + $0x10] sm:$0xff]   ;;  %s1499_s28 = scalar_lea.vmem %s1802_s7, 1024  ;;  %p1866_p10 = scmp.ne.s32.totalorder %s1860_s14, 0 }
  0x5a   : > { %v1382_v11 = vld [vmem:[#allocation5 + $0x18] sm:$0xff]   ;;  %v1383_v12 = vld [vmem:[#allocation5 + $0x20] sm:$0xff]   ;;  %v1384_v13 = vld [vmem:[#allocation5 + $0x28] sm:$0xff]   ;;  %p1500_p11 = scmp.ne.s32.totalorder %s1802_s7, %s1499_s28  ;;  %s1576_s19 = smov [#allocation8]  }
  0x5b   : > { %v1385_v14 = vld [vmem:[#allocation5 + $0x30] sm:$0xff]   ;;  %v1386_v15 = vld [vmem:[#allocation5 + $0x38] sm:$0xff]   ;;  %v1387_v16 = vld [vmem:[#allocation5 + $0x40] sm:$0xff]   ;;  %s1503_s30 = sshll.u32 %s1576_s19, 4  ;;  %s1504_s30 = int_to_ptr.vmem [resolvable:$false] %s1503_s30 }
  0x5c   : > { %1253 = vmatpush3.bf16.msra.mxu0 %v1372_v1  ;;  %v1388_v17 = vld [vmem:[#allocation5 + $0x48] sm:$0xff]   ;;  %v1389_v18 = vld [vmem:[#allocation5 + $0x50] sm:$0xff]   ;;  %v1390_v19 = vld [vmem:[#allocation5 + $0x58] sm:$0xff]   ;;  %p1501_p1 = pnand %p1500_p11, %p1866_p10  ;;  %s1505_s8 = scalar_lea.vmem %s1504_s30, 2048 }
  0x5d   : > { %1254 = vmatprep.subr.bf16.mxu0 %v1373_v2  ;;  %v1391_v20 = vld [vmem:[#allocation5 + $0x60] sm:$0xff]   ;;  %v1392_v21 = vld [vmem:[#allocation5 + $0x68] sm:$0xff]   ;;  %v1393_v22 = vld [vmem:[#allocation5 + $0x70] sm:$0xff]   ;;  %p1506_p6 = scmp.lt.s32.totalorder %s1802_s7, %s1504_s30  ;;  %p1507_p12 = scmp.lt.s32.totalorder %s1505_s8, %s1499_s28 }
  0x5e   : > { %v1394_v23 = vld [vmem:[#allocation5 + $0x78] sm:$0xff]   ;;  %v1397_v24 = vld [vmem:[%s1735_s13 + $0x4] ss:$8 sps:$4 sm:$0xff]   ;;  %p1502_p2 = pneg %p1501_p1 }
  0x5f   : > { %753 = vmatprep.mubr.bf16.mxu1 %v1397_v24  ;;  %p1508_p7 = por %p1507_p12, %p1506_p6 }
  0x60   : > { %1255 = vmatpush3.bf16.msra.mxu0 %v1373_v2 }
  0x61   : > { %1256 = vmatprep.subr.bf16.mxu0 %v1374_v3  ;;  %p1509_p9 = pnand %p1508_p7, %p1502_p2 }
  0x64   : > { %1257 = vmatpush3.bf16.msra.mxu0 %v1374_v3 }
  0x65   : > { %1258 = vmatprep.subr.bf16.mxu0 %v1375_v5 }
  0x68   : > { %1259 = vmatpush3.bf16.msra.mxu0 %v1375_v5 }
  0x69   : > { %1260 = vmatprep.subr.bf16.mxu0 %v1376_v6 }
  0x6c   : > { %1261 = vmatpush3.bf16.msra.mxu0 %v1376_v6 }
  0x6d   : > { %1262 = vmatprep.subr.bf16.mxu0 %v1377_v7 }
  0x70   : > { %1263 = vmatpush3.bf16.msra.mxu0 %v1377_v7 }
  0x71   : > { %1264 = vmatprep.subr.bf16.mxu0 %v1378_v8 }
  0x74   : > { %1265 = vmatpush3.bf16.msra.mxu0 %v1378_v8 }
  0x77   : > { %1267 = vmatmul.mubr.bf16.vlgmr.msra.gmra.mxu0 %v1380_v9  ;;  %v1395_v9 = vld [vmem:[%s1735_s13] ss:$8 sps:$4 sm:$0xff]  }
  0x78   : > { %1270 = vmatprep.mubr.bf16.mxu0 %v1381_v10  ;;  %v1398_v10 = vld [vmem:[%s1735_s13 + $0x14] ss:$8 sps:$4 sm:$0xff]  }
  0x7f   : > { %1271 = vmatmul.mubr.bf16.gmra.mxu0 %v1382_v11  ;;  %v1400_v11 = vld [vmem:[%s1735_s13 + $0x10] ss:$8 sps:$4 sm:$0xff]  }
  0x80   : > { %1274 = vmatprep.mubr.bf16.mxu0 %v1383_v12  ;;  %v1401_v12 = vld [vmem:[%s1735_s13 + $0x24] ss:$8 sps:$4 sm:$0xff]  }
  0x87   : > { %1275 = vmatmul.mubr.bf16.gmra.mxu0 %v1384_v13  ;;  %v1403_v13 = vld [vmem:[%s1735_s13 + $0x20] ss:$8 sps:$4 sm:$0xff]  }
  0x88   : > { %1278 = vmatprep.mubr.bf16.mxu0 %v1385_v14  ;;  %v1404_v14 = vld [vmem:[%s1735_s13 + $0x34] ss:$8 sps:$4 sm:$0xff]  }
  0x8f   : > { %1279 = vmatmul.mubr.bf16.gmra.mxu0 %v1386_v15  ;;  %v1406_v15 = vld [vmem:[%s1735_s13 + $0x30] ss:$8 sps:$4 sm:$0xff]  }
  0x90   : > { %1282 = vmatprep.mubr.bf16.mxu0 %v1387_v16  ;;  %v1407_v16 = vld [vmem:[%s1735_s13 + $0x44] ss:$8 sps:$4 sm:$0xff]  }
  0x97   : > { %1283 = vmatmul.mubr.bf16.gmra.mxu0 %v1388_v17  ;;  %v1409_v17 = vld [vmem:[%s1735_s13 + $0x40] ss:$8 sps:$4 sm:$0xff]  }
  0x98   : > { %1286 = vmatprep.mubr.bf16.mxu0 %v1389_v18  ;;  %v1410_v18 = vld [vmem:[%s1735_s13 + $0x54] ss:$8 sps:$4 sm:$0xff]  }
  0x9f   : > { %1287 = vmatmul.mubr.bf16.gmra.mxu0 %v1390_v19  ;;  %v1412_v19 = vld [vmem:[%s1735_s13 + $0x50] ss:$8 sps:$4 sm:$0xff]  }
  0xa0   : > { %1290 = vmatprep.mubr.bf16.mxu0 %v1391_v20  ;;  %v1413_v20 = vld [vmem:[%s1735_s13 + $0x64] ss:$8 sps:$4 sm:$0xff]  }
  0xa7   : > { %1291 = vmatmul.mubr.bf16.gmra.mxu0 %v1392_v21  ;;  %v1415_v21 = vld [vmem:[%s1735_s13 + $0x60] ss:$8 sps:$4 sm:$0xff]  }
  0xa8   : > { %1294 = vmatprep.mubr.bf16.mxu0 %v1393_v22  ;;  %v1416_v22 = vld [vmem:[%s1735_s13 + $0x74] ss:$8 sps:$4 sm:$0xff]  }
  0xaf   : > { %1295 = vmatmul.mubr.bf16.gmra.mxu0 %v1394_v23  ;;  %v1418_v23 = vld [vmem:[%s1735_s13 + $0x70] ss:$8 sps:$4 sm:$0xff]  }
 0x137   : > { %v1268_v25 = vpop.f32.mrf.mxu0 }
 0x139   : > { %v1746_v26 = vpop.f32.mrf.mxu0 }
 0x13b   : > { %v1269_v27 = vpop.f32.mrf.mxu0 }
 0x13c   : > { %v619_v28 = vpack.c.bf16 %v1269_v27, %v1268_v25  ;;  %v1767_v27 = vld [vmem:[%s1849_s3] ss:$0 sm:$0xff] }
 0x13d   : > { %v478_v29 = vpop.f32.mrf.mxu0 }
 0x13e   : > { %v618_v30 = vpack.c.bf16 %v478_v29, %v1746_v26 }
 0x13f   : > { %v1272_v31 = vpop.f32.mrf.mxu0 }
 0x141   : > { %v491_v32 = vpop.f32.mrf.mxu0 }
 0x143   : > { %v1273_v33 = vpop.f32.mrf.mxu0 }
 0x144   : > { %v621_v34 = vpack.c.bf16 %v1273_v33, %v1272_v31 }
 0x145   : > { %v494_v35 = vpop.f32.mrf.mxu0 }
 0x146   : > { %v620_v36 = vpack.c.bf16 %v494_v35, %v491_v32 }
 0x147   : > { %v1276_v37 = vpop.f32.mrf.mxu0 }
 0x149   : > { %v507_v38 = vpop.f32.mrf.mxu0 }
 0x14b   : > { %v1277_v39 = vpop.f32.mrf.mxu0 }
 0x14c   : > { %v623_v2 = vpack.c.bf16 %v1277_v39, %v1276_v37 }
 0x14d   : > { %v510_v40 = vpop.f32.mrf.mxu0 }
 0x14e   : > { %v622_v4 = vpack.c.bf16 %v510_v40, %v507_v38 }
 0x14f   : > { %v1280_v41 = vpop.f32.mrf.mxu0 }
 0x151   : > { %v523_v42 = vpop.f32.mrf.mxu0 }
 0x153   : > { %v1281_v43 = vpop.f32.mrf.mxu0 }
 0x154   : > { %v625_v61 = vpack.c.bf16 %v1281_v43, %v1280_v41 }
 0x155   : > { %v526_v44 = vpop.f32.mrf.mxu0 }
 0x156   : > { %v624_v0 = vpack.c.bf16 %v526_v44, %v523_v42 }
 0x157   : > { %v1284_v45 = vpop.f32.mrf.mxu0 }
 0x159   : > { %v539_v46 = vpop.f32.mrf.mxu0 }
 0x15b   : > { %v1285_v47 = vpop.f32.mrf.mxu0 }
 0x15c   : > { %v627_v7 = vpack.c.bf16 %v1285_v47, %v1284_v45 }
 0x15d   : > { %v542_v48 = vpop.f32.mrf.mxu0 }
 0x15e   : > { %v626_v8 = vpack.c.bf16 %v542_v48, %v539_v46 }
 0x15f   : > { %v1288_v49 = vpop.f32.mrf.mxu0 }
 0x161   : > { %v555_v50 = vpop.f32.mrf.mxu0 }
 0x163   : > { %v1289_v51 = vpop.f32.mrf.mxu0 }
 0x164   : > { %v629_v5 = vpack.c.bf16 %v1289_v51, %v1288_v49 }
 0x165   : > { %v558_v52 = vpop.f32.mrf.mxu0 }
 0x166   : > { %v628_v6 = vpack.c.bf16 %v558_v52, %v555_v50 }
 0x167   : > { %v1292_v53 = vpop.f32.mrf.mxu0 }
 0x169   : > { %v571_v54 = vpop.f32.mrf.mxu0 }
 0x16b   : > { %v1293_v55 = vpop.f32.mrf.mxu0 }
 0x16c   : > { %v631_v1 = vpack.c.bf16 %v1293_v55, %v1292_v53 }
 0x16d   : > { %v574_v56 = vpop.f32.mrf.mxu0 }
 0x16e   : > { %v630_v3 = vpack.c.bf16 %v574_v56, %v571_v54 }
 0x16f   : > { %v1296_v57 = vpop.f32.mrf.mxu0 }
 0x171   : > { %v587_v58 = vpop.f32.mrf.mxu0 }
 0x173   : > { %v1297_v59 = vpop.f32.mrf.mxu0 }
 0x174   : > { %v633_v60 = vpack.c.bf16 %v1297_v59, %v1296_v57 }
 0x175   : > { %v590_v62 = vpop.f32.mrf.mxu0 }
 0x176   : > { %v632_v63 = vpack.c.bf16 %v590_v62, %v587_v58  ;;  %1186 = vmatprep.subr.bf16.mxu1 %v633_v60 }
 0x177   : > { %1187 = vmatpush3.bf16.msra.mxu1 %v625_v61 }
 0x178   : > { %1188 = vmatprep.subr.bf16.mxu1 %v632_v63 }
 0x17b   : > { %1189 = vmatpush3.bf16.msra.mxu1 %v624_v0 }
 0x17c   : > { %1190 = vmatprep.subr.bf16.mxu1 %v631_v1 }
 0x17f   : > { %1191 = vmatpush3.bf16.msra.mxu1 %v623_v2 }
 0x180   : > { %1192 = vmatprep.subr.bf16.mxu1 %v630_v3 }
 0x183   : > { %1193 = vmatpush3.bf16.msra.mxu1 %v622_v4 }
 0x184   : > { %1194 = vmatprep.subr.bf16.mxu1 %v629_v5 }
 0x187   : > { %1195 = vmatpush3.bf16.msra.mxu1 %v621_v34 }
 0x188   : > { %1196 = vmatprep.subr.bf16.mxu1 %v628_v6 }
 0x18b   : > { %1197 = vmatpush3.bf16.msra.mxu1 %v620_v36 }
 0x18c   : > { %1198 = vmatprep.subr.bf16.mxu1 %v627_v7 }
 0x18f   : > { %1199 = vmatpush3.bf16.msra.mxu1 %v619_v28 }
 0x190   : > { %1200 = vmatprep.subr.bf16.mxu1 %v626_v8 }
 0x193   : > { %1201 = vmatpush3.bf16.msra.mxu1 %v618_v30 }
 0x196   : > { %754 = vmatmul.mubr.bf16.vlgmr.msra.gmra.mxu1 %v1395_v9 }
 0x197   : > { %761 = vmatprep.mubr.bf16.mxu1 %v1398_v10 }
 0x19e   : > { %762 = vmatmul.mubr.bf16.gmra.mxu1 %v1400_v11 }
 0x19f   : > { %769 = vmatprep.mubr.bf16.mxu1 %v1401_v12 }
 0x1a6   : > { %770 = vmatmul.mubr.bf16.gmra.mxu1 %v1403_v13 }
 0x1a7   : > { %777 = vmatprep.mubr.bf16.mxu1 %v1404_v14 }
 0x1ae   : > { %778 = vmatmul.mubr.bf16.gmra.mxu1 %v1406_v15 }
 0x1af   : > { %785 = vmatprep.mubr.bf16.mxu1 %v1407_v16 }
 0x1b6   : > { %786 = vmatmul.mubr.bf16.gmra.mxu1 %v1409_v17 }
 0x1b7   : > { %793 = vmatprep.mubr.bf16.mxu1 %v1410_v18 }
 0x1be   : > { %794 = vmatmul.mubr.bf16.gmra.mxu1 %v1412_v19 }
 0x1bf   : > { %801 = vmatprep.mubr.bf16.mxu1 %v1413_v20 }
 0x1c6   : > { %802 = vmatmul.mubr.bf16.gmra.mxu1 %v1415_v21 }
 0x1c7   : > { %809 = vmatprep.mubr.bf16.mxu1 %v1416_v22 }
 0x1ce   : > { %810 = vmatmul.mubr.bf16.gmra.mxu1 %v1418_v23 }
 0x256   : > { %v1202_v24 = vpop.f32.mrf.mxu1 }
 0x258   : > { %v1203_v25 = vpop.f32.mrf.mxu1 }
 0x259   : > { %v1204_v26 = vadd.f32 %v1203_v25, %v1202_v24 }
 0x25a   : > { %v1205_v28 = vpop.f32.mrf.mxu1 }
 0x25b   : > { %v756_v30 = vadd.f32 %v1204_v26, %v1767_v27 }
 0x25c   : > { %v1206_v29 = vpop.f32.mrf.mxu1 }
 0x25d   : > { %v1207_v31 = vadd.f32 %v1206_v29, %v1205_v28  ;;  %v818_v35 = vmax.f32 %v756_v30, 0.0 }
 0x25e   : > { %v1208_v32 = vpop.f32.mrf.mxu1 }
 0x25f   : > { %v759_v33 = vadd.f32 %v1207_v31, %v1767_v27 }
 0x260   : > { %v1209_v34 = vpop.f32.mrf.mxu1 }
 0x261   : > { %v819_v36 = vmax.f32 %v759_v33, 0.0  ;;  %v1210_v37 = vadd.f32 %v1209_v34, %v1208_v32 }
 0x262   : > { %v1211_v38 = vpop.f32.mrf.mxu1 }
 0x263   : > { %v1118_v39 = vpack.c.bf16 %v819_v36, %v818_v35  ;;  %v764_v41 = vadd.f32 %v1210_v37, %v1767_v27 }
 0x264   : > { %v1212_v40 = vpop.f32.mrf.mxu1 }
 0x265   : > { %1119 = vst [vmem:[%s1772_s5] sm:$0xff] %v1118_v39   ;;  %v1213_v42 = vadd.f32 %v1212_v40, %v1211_v38  ;;  %v820_v46 = vmax.f32 %v764_v41, 0.0 }
 0x266   : > { %v1214_v43 = vpop.f32.mrf.mxu1 }
 0x267   : > { %v767_v44 = vadd.f32 %v1213_v42, %v1767_v27 }
 0x268   : > { %v1215_v45 = vpop.f32.mrf.mxu1 }
 0x269   : > { %v821_v47 = vmax.f32 %v767_v44, 0.0  ;;  %v1216_v48 = vadd.f32 %v1215_v45, %v1214_v43 }
 0x26a   : > { %v1217_v49 = vpop.f32.mrf.mxu1 }
 0x26b   : > { %v1123_v50 = vpack.c.bf16 %v821_v47, %v820_v46  ;;  %v772_v52 = vadd.f32 %v1216_v48, %v1767_v27 }
 0x26c   : > { %v1218_v51 = vpop.f32.mrf.mxu1 }
 0x26d   : > { %1155 = vst [vmem:[%s1772_s5 + $0x8] sm:$0xff] %v1123_v50   ;;  %v1219_v53 = vadd.f32 %v1218_v51, %v1217_v49  ;;  %v822_v57 = vmax.f32 %v772_v52, 0.0 }
 0x26e   : > { %v1220_v54 = vpop.f32.mrf.mxu1 }
 0x26f   : > { %v775_v55 = vadd.f32 %v1219_v53, %v1767_v27 }
 0x270   : > { %v1221_v56 = vpop.f32.mrf.mxu1 }
 0x271   : > { %v823_v58 = vmax.f32 %v775_v55, 0.0  ;;  %v1222_v59 = vadd.f32 %v1221_v56, %v1220_v54 }
 0x272   : > { %v1223_v60 = vpop.f32.mrf.mxu1 }
 0x273   : > { %v1128_v61 = vpack.c.bf16 %v823_v58, %v822_v57  ;;  %v780_v63 = vadd.f32 %v1222_v59, %v1767_v27 }
 0x274   : > { %v1224_v62 = vpop.f32.mrf.mxu1 }
 0x275   : > { %1156 = vst [vmem:[%s1772_s5 + $0x10] sm:$0xff] %v1128_v61   ;;  %v1225_v0 = vadd.f32 %v1224_v62, %v1223_v60  ;;  %v824_v4 = vmax.f32 %v780_v63, 0.0 }
 0x276   : > { %v1226_v1 = vpop.f32.mrf.mxu1 }
 0x277   : > { %v783_v2 = vadd.f32 %v1225_v0, %v1767_v27 }
 0x278   : > { %v1227_v3 = vpop.f32.mrf.mxu1 }
 0x279   : > { %v825_v5 = vmax.f32 %v783_v2, 0.0  ;;  %v1228_v6 = vadd.f32 %v1227_v3, %v1226_v1 }
 0x27a   : > { %v1229_v7 = vpop.f32.mrf.mxu1 }
 0x27b   : > { %v1133_v8 = vpack.c.bf16 %v825_v5, %v824_v4  ;;  %v788_v10 = vadd.f32 %v1228_v6, %v1767_v27 }
 0x27c   : > { %v1230_v9 = vpop.f32.mrf.mxu1 }
 0x27d   : > { %1157 = vst [vmem:[%s1772_s5 + $0x18] sm:$0xff] %v1133_v8   ;;  %v1231_v11 = vadd.f32 %v1230_v9, %v1229_v7  ;;  %v826_v15 = vmax.f32 %v788_v10, 0.0 }
 0x27e   : > { %v1232_v12 = vpop.f32.mrf.mxu1 }
 0x27f   : > { %v791_v13 = vadd.f32 %v1231_v11, %v1767_v27 }
 0x280   : > { %v1233_v14 = vpop.f32.mrf.mxu1 }
 0x281   : > { %v827_v16 = vmax.f32 %v791_v13, 0.0  ;;  %v1234_v17 = vadd.f32 %v1233_v14, %v1232_v12 }
 0x282   : > { %v1235_v18 = vpop.f32.mrf.mxu1 }
 0x283   : > { %v1138_v19 = vpack.c.bf16 %v827_v16, %v826_v15  ;;  %v796_v21 = vadd.f32 %v1234_v17, %v1767_v27 }
 0x284   : > { %v1236_v20 = vpop.f32.mrf.mxu1 }
 0x285   : > { %1158 = vst [vmem:[%s1772_s5 + $0x20] sm:$0xff] %v1138_v19   ;;  %v1237_v22 = vadd.f32 %v1236_v20, %v1235_v18  ;;  %v828_v26 = vmax.f32 %v796_v21, 0.0 }
 0x286   : > { %v1238_v23 = vpop.f32.mrf.mxu1 }
 0x287   : > { %v799_v24 = vadd.f32 %v1237_v22, %v1767_v27 }
 0x288   : > { %v1239_v25 = vpop.f32.mrf.mxu1 }
 0x289   : > { %v829_v28 = vmax.f32 %v799_v24, 0.0  ;;  %v1240_v29 = vadd.f32 %v1239_v25, %v1238_v23 }
 0x28a   : > { %v1241_v30 = vpop.f32.mrf.mxu1 }
 0x28b   : > { %v1143_v31 = vpack.c.bf16 %v829_v28, %v828_v26  ;;  %v804_v33 = vadd.f32 %v1240_v29, %v1767_v27 }
 0x28c   : > { %v1242_v32 = vpop.f32.mrf.mxu1 }
 0x28d   : > { %1159 = vst [vmem:[%s1772_s5 + $0x28] sm:$0xff] %v1143_v31   ;;  %v1243_v34 = vadd.f32 %v1242_v32, %v1241_v30  ;;  %v830_v38 = vmax.f32 %v804_v33, 0.0 }
 0x28e   : > { %v1244_v35 = vpop.f32.mrf.mxu1 }
 0x28f   : > { %v807_v36 = vadd.f32 %v1243_v34, %v1767_v27 }
 0x290   : > { %v1245_v37 = vpop.f32.mrf.mxu1 }
 0x291   : > { %v831_v39 = vmax.f32 %v807_v36, 0.0  ;;  %v1246_v40 = vadd.f32 %v1245_v37, %v1244_v35 }
 0x292   : > { %v1247_v41 = vpop.f32.mrf.mxu1 }
 0x293   : > { %v1148_v42 = vpack.c.bf16 %v831_v39, %v830_v38  ;;  %v812_v44 = vadd.f32 %v1246_v40, %v1767_v27 }
 0x294   : > { %v1248_v43 = vpop.f32.mrf.mxu1 }
 0x295   : > { %1160 = vst [vmem:[%s1772_s5 + $0x30] sm:$0xff] %v1148_v42   ;;  %v1249_v45 = vadd.f32 %v1248_v43, %v1247_v41  ;;  %v832_v47 = vmax.f32 %v812_v44, 0.0 }
 0x297   : > { %v815_v46 = vadd.f32 %v1249_v45, %v1767_v27 }
 0x299   : > { %v833_v48 = vmax.f32 %v815_v46, 0.0 }
 0x29b   : > { %v1153_v49 = vpack.c.bf16 %v833_v48, %v832_v47 }
 0x29d   : > { %1161 = vst [vmem:[%s1772_s5 + $0x38] sm:$0xff] %v1153_v49  }
 0x29e   : > { %1512 = shalt.err (!%p1509_p9)
}
 0x29f   : > { %s1513_s10 = scalar_lea.hbm %s1800_s26, 1024  ;;  %s1517_s21 = scalar_lea.hbm %s1850_s4, 2048 }
 0x2a0   : > { %p1514_p13 = scmp.ne.s32.totalorder %s1800_s26, %s1513_s10  ;;  %p1518_p4 = scmp.lt.s32.totalorder %s1800_s26, %s1850_s4 }
 0x2a1   : > { %p1519_p8 = scmp.lt.s32.totalorder %s1517_s21, %s1513_s10 }
 0x2a2   : > { %p1515_p5 = pnand %p1514_p13, %p1866_p10 }
 0x2a3   : > { %p1520_p3 = por %p1519_p8, %p1518_p4 }
 0x2a4   : > { %p1516_p0 = pneg %p1515_p5 }
 0x2a6   : > { %p1521_p11 = pnand %p1520_p3, %p1516_p0 }
 0x2a8   : > { %1524 = shalt.err (!%p1521_p11)
}
 0x2a9   : > { %s1577_s5 = smov 64   ;;  %s1578_s6 = smov 4  }
 0x2aa   : > { %1308 = dma.vmem_to_hbm [thread:$0]  (%p1866_p10), %s1802_s7, 1024, %s1800_s26, %s915_s27, %s1577_s5, %s1577_s5, %s1578_s6  }
 0x2ab PF: > { %s943_s25 = sand.u32 1, %s1555_s15   ;;  %p1867_p1 = scmp.ne.s32.totalorder %s1856_s22, 0 }
 0x2ac   : > { %p1868_p2 = scmp.ge.s32.totalorder %s1567_s18, 2  ;;  %s944_s24 = scalar_lea.sflag [#allocation4], %s943_s25 }
 0x2ae   : > { %p1322_p6 = pnand %p1868_p2, %p1867_p1 }
 0x2b0   : > { %p1323_p12 = pneg %p1322_p6 }
 0x2b2   : > { %1550 = dma.done.wait (%p1323_p12), %s944_s24, 1024  }
 0x2b3   : > { %1552 = vsyncadd (%p1323_p12), %s944_s24, 4294966272  ;;  %p18_p7 = scmp.ge.s32.totalorder %s1676_s11, 4   ;;  %s1869_s15 = smov %s1559_s16 }
 0x2b4   : > { %s1870_s16 = smov %s1563_s17  ;;  %s1871_s17 = smov %s1692_s20 }
 0x2b5   : > { %s1872_s18 = smov %s1676_s11  ;;  %20 = sbr.rel (!%p18_p7) target bundleno = 6 (0x6), region = 89 }
 0x2ba   :  { %949 = vsyncpa [#allocation3], 1 }
 0x2bb   :  { %951 = vsyncpa [#allocation3 + $0x1], 1 }
 0x2bc   :  { %952 = vsyncpa [#allocation6], 1 }
 0x2bd   :  { %953 = vsyncpa [#allocation4], 1 }
 0x2be   :  { %955 = vsyncpa [#allocation4 + $0x1], 1 }

</bundles_post_ra>
